<compile_context>
chip_gen: v6e
topology: v6e:2x2x1
jax: 0.10.0
libtpu: 0.0.40
codegen_flags: <defaults>
</compile_context>

<pallas_src>
import jax
import jax.numpy as jnp
from jax.experimental import pallas as pl
from jax.experimental.pallas import tpu as pltpu

HP = 128                        # lane-dense padded hidden width (all H_l <= 128)
VMEM_LIMIT = 48 * 1024 * 1024   # fits v7x's 64 MiB, above default scoped limits


# ---------------------------------------------------------------------------
# Phase 0: x-side transforms, one wide matmul, lane-dense outputs.
# ---------------------------------------------------------------------------
def _xform_kernel(x_ref, wcat_ref, g0_ref, xres_ref):
    y = jnp.dot(x_ref[...], wcat_ref[...], preferred_element_type=jnp.float32)
    g0_ref[...] = y[:, :HP].astype(g0_ref.dtype)   # streamed operand -> bf16
    xres_ref[...] = y[:, HP:]                      # epilogue residuals stay f32


# ---------------------------------------------------------------------------
# Phases 1..3: adjacency aggregation with f32 VMEM accumulator.
#   mid layers output g_{l+1} = relu(...) @ Wg_{l+1}  (bf16, feeds next layer)
#   last layer outputs the embeddings (f32).
# ---------------------------------------------------------------------------
def _agg_mid_kernel(adj_ref, g_ref, xres_ref, wta_ref, bt_ref, wgn_ref,
                    gnext_ref, acc_ref):
    k = pl.program_id(1)

    @pl.when(k == 0)
    def _init():
        acc_ref[...] = jnp.zeros_like(acc_ref)

    acc_ref[...] += jnp.dot(adj_ref[...], g_ref[...],
                            preferred_element_type=jnp.float32)

    @pl.when(k == pl.num_programs(1) - 1)
    def _finalize():
        h = jnp.dot(acc_ref[...], wta_ref[...], preferred_element_type=jnp.float32)
        h = jnp.maximum(h + xres_ref[...] + bt_ref[...], 0.0)
        gnext_ref[...] = jnp.dot(
            h, wgn_ref[...], preferred_element_type=jnp.float32
        ).astype(gnext_ref.dtype)


def _agg_last_kernel(adj_ref, g_ref, xres_ref, wta_ref, bt_ref,
                     emb_ref, acc_ref):
    k = pl.program_id(1)

    @pl.when(k == 0)
    def _init():
        acc_ref[...] = jnp.zeros_like(acc_ref)

    acc_ref[...] += jnp.dot(adj_ref[...], g_ref[...],
                            preferred_element_type=jnp.float32)

    @pl.when(k == pl.num_programs(1) - 1)
    def _finalize():
        h = jnp.dot(acc_ref[...], wta_ref[...], preferred_element_type=jnp.float32)
        h = jnp.maximum(h + xres_ref[...] + bt_ref[...], 0.0)
        emb_ref[...] = h.astype(emb_ref.dtype)


# ---------------------------------------------------------------------------
# Wrapper
# ---------------------------------------------------------------------------
def gcn_encoder_with_features(features, adj, params, *, tile_m=256, tile_k=256):
    """features: [N, F] f32, adj: [N, N] f32 (dense normalized adjacency)."""
    N, F = features.shape
    H3 = params["wg2"].shape[1]
    assert max(params["wg0"].shape[1], params["wg1"].shape[1], H3) <= HP
    tm = min(tile_m, N)
    tk = min(tile_k, N)
    assert N % tm == 0 and N % tk == 0, "N must be divisible by the tile sizes"

    f32 = jnp.float32

    def pad2(w, rows, cols):
        return jnp.zeros((rows, cols), f32).at[: w.shape[0], : w.shape[1]].set(
            w.astype(f32))

    # Fuse the four x-side matmuls into one: x @ [wg0 | wt0b | wt1b | wt2b]
    wcat = jnp.concatenate(
        [pad2(params["wg0"], F, HP), pad2(params["wt0b"], F, HP),
         pad2(params["wt1b"], F, HP), pad2(params["wt2b"], F, HP)], axis=1)

    wt_a = [pad2(params["wt0a"], HP, HP), pad2(params["wt1a"], HP, HP),
            pad2(params["wt2a"], HP, HP)]
    bias = [pad2(params["bt0"], 1, HP), pad2(params["bt1"], 1, HP),
            pad2(params["bt2"], 1, HP)]
    wg_next = [pad2(params["wg1"], HP, HP), pad2(params["wg2"], HP, HP)]

    # Adjacency streamed in bf16 (dominant HBM traffic); accumulation stays f32.
    adj_b = adj.astype(jnp.bfloat16)

    cp_xform = pltpu.CompilerParams(dimension_semantics=("parallel",),
                                    vmem_limit_bytes=VMEM_LIMIT)
    cp_agg = pltpu.CompilerParams(dimension_semantics=("parallel", "arbitrary"),
                                  vmem_limit_bytes=VMEM_LIMIT)

    # ---- phase 0 ----------------------------------------------------------
    g0, xres = pl.pallas_call(
        _xform_kernel,
        out_shape=(jax.ShapeDtypeStruct((N, HP), jnp.bfloat16),
                   jax.ShapeDtypeStruct((N, 3 * HP), f32)),
        grid=(N // tm,),
        in_specs=[pl.BlockSpec((tm, F), lambda i: (i, 0)),
                  pl.BlockSpec((F, 4 * HP), lambda i: (0, 0))],
        out_specs=(pl.BlockSpec((tm, HP), lambda i: (i, 0)),
                   pl.BlockSpec((tm, 3 * HP), lambda i: (i, 0))),
        compiler_params=cp_xform,
        cost_estimate=pl.CostEstimate(flops=2 * N * F * 4 * HP,
                                      transcendentals=0,
                                      bytes_accessed=4 * N * (F + 4 * HP)),
    )(features.astype(f32), wcat)

    # ---- phases 1..3 -------------------------------------------------------
    def res_map(col):
        return lambda i, k: (i, col)   # selects this layer's x @ Wt_b residual slab

    def agg_layer(g, layer, last):
        kernel = _agg_last_kernel if last else _agg_mid_kernel
        operands = [adj_b, g, xres, wt_a[layer], bias[layer]]
        in_specs = [
            pl.BlockSpec((tm, tk), lambda i, k: (i, k)),   # adj tile (bf16)
            pl.BlockSpec((tk, HP), lambda i, k: (k, 0)),   # (h @ Wg) slab tile (bf16)
            pl.BlockSpec((tm, HP), res_map(layer)),        # x @ Wt_b residual (f32)
            pl.BlockSpec((HP, HP), lambda i, k: (0, 0)),   # Wt_a  (resident)
            pl.BlockSpec((1, HP), lambda i, k: (0, 0)),    # bias  (resident)
        ]
        if not last:
            operands.append(wg_next[layer])
            in_specs.append(pl.BlockSpec((HP, HP), lambda i, k: (0, 0)))
        out_dtype = f32 if last else jnp.bfloat16
        flops = 2 * N * N * HP + (1 if last else 2) * 2 * N * HP * HP
        bytes_acc = 2 * N * N + 2 * N * HP + 4 * N * HP + (2 if last else 4) * N * HP
        return pl.pallas_call(
            kernel,
            out_shape=jax.ShapeDtypeStruct((N, HP), out_dtype),
            grid=(N // tm, N // tk),
            in_specs=in_specs,
            out_specs=pl.BlockSpec((tm, HP), lambda i, k: (i, 0)),
            scratch_shapes=[pltpu.VMEM((tm, HP), jnp.float32)],
            compiler_params=cp_agg,
            cost_estimate=pl.CostEstimate(flops=flops, transcendentals=0,
                                          bytes_accessed=bytes_acc),
        )(*operands)

    g1 = agg_layer(g0, 0, last=False)
    g2 = agg_layer(g1, 1, last=False)
    emb = agg_layer(g2, 2, last=True)
    return emb[:, :H3]


# ---------------------------------------------------------------------------
# Plain-JAX f32 reference (PyTorch eval-mode semantics) and parameter init.
# ---------------------------------------------------------------------------
def reference_forward(features, adj, p):
    g0 = adj @ (features @ p["wg0"])
    h1 = jax.nn.relu(g0 @ p["wt0a"] + features @ p["wt0b"] + p["bt0"])
    g1 = adj @ (h1 @ p["wg1"])
    h2 = jax.nn.relu(g1 @ p["wt1a"] + features @ p["wt1b"] + p["bt1"])
    g2 = adj @ (h2 @ p["wg2"])
    return jax.nn.relu(g2 @ p["wt2a"] + features @ p["wt2b"] + p["bt2"])


def init_params(key, num_features, h1, h2, h3):
    ks = jax.random.split(key, 12)

    def w(k, shape):
        return jax.random.normal(k, shape, jnp.float32) * 0.1

    # GraphConvolution weights: (in, out), bias=False
    wg0 = w(ks[0], (num_features, h1))
    wg1 = w(ks[1], (h1, h2))
    wg2 = w(ks[2], (h2, h3))
    # trans_h* Linear stored pre-transposed and split:
    #   cat([gc_out, x]) @ Wt == gc_out @ Wta + x @ Wtb
    wt0a = w(ks[3], (h1, h1)); wt0b = w(ks[4], (num_features, h1))
    wt1a = w(ks[5], (h2, h2)); wt1b = w(ks[6], (num_features, h2))
    wt2a = w(ks[7], (h3, h3)); wt2b = w(ks[8], (num_features, h3))
    bt0 = w(ks[9], (1, h1))
    bt1 = w(ks[10], (1, h2))
    bt2 = w(ks[11], (1, h3))
    return dict(wg0=wg0, wg1=wg1, wg2=wg2,
                wt0a=wt0a, wt0b=wt0b, bt0=bt0,
                wt1a=wt1a, wt1b=wt1b, bt1=bt1,
                wt2a=wt2a, wt2b=wt2b, bt2=bt2)


if __name__ == "__main__":
    key = jax.random.PRNGKey(0)
    k_x, k_a, k_p = jax.random.split(key, 3)

    # small GCN: N nodes, F input features, hidden dims h1/h2/h3
    N, F = 512, 32
    H1, H2, H3 = 32, 16, 16

    features = jax.random.normal(k_x, (N, F), jnp.float32)

    # random symmetric adjacency with self-loops, row-normalized (dense)
    a = (jax.random.uniform(k_a, (N, N)) < 0.05).astype(jnp.float32)
    a = jnp.maximum(a, a.T) + jnp.eye(N, dtype=jnp.float32)
    deg = jnp.sum(a, axis=1, keepdims=True)
    adj = a / deg

    params = init_params(k_p, F, H1, H2, H3)

    out = gcn_encoder_with_features(features, adj, params, tile_m=256, tile_k=256)
    out = jax.block_until_ready(out)

    ref = reference_forward(features, adj, params)
    assert out.shape == (N, H3)
    # Relaxed tolerance: the adjacency / aggregation operands are streamed in
    # bf16 (accumulation in f32), so compare against the pure-f32 reference
    # with a few-percent budget.
    assert jnp.allclose(out, ref, atol=3e-2, rtol=3e-2), float(
        jnp.max(jnp.abs(out - ref)))

    print("KERNEL_OK")
</pallas_src>

<mosaic_0001>
module attributes {stable_mosaic.version = 11 : i64} {
  func.func @_xform_kernel(%arg0: i32, %arg1: memref<256x32xf32, #tpu.memory_space<vmem>>, %arg2: memref<32x512xf32, #tpu.memory_space<vmem>>, %arg3: memref<256x128xbf16, #tpu.memory_space<vmem>>, %arg4: memref<256x384xf32, #tpu.memory_space<vmem>>) attributes {dimension_semantics = [#tpu.dimension_semantics<parallel>], iteration_bounds = array<i64: 2>, scalar_prefetch = 0 : i64, scratch_operands = 0 : i64, tpu.core_type = #tpu.core_type<tc>, window_params = [{transform_indices = @transform_0, window_bounds = array<i64: 256, 32>}, {pipeline_mode = #tpu.pipeline_mode<synchronous>, transform_indices = @transform_1, window_bounds = array<i64: 32, 512>}, {transform_indices = @transform_2, window_bounds = array<i64: 256, 128>}, {transform_indices = @transform_3, window_bounds = array<i64: 256, 384>}]} {
    %c0 = arith.constant 0 : index
    %c0_0 = arith.constant 0 : index
    %0 = vector.load %arg1[%c0, %c0_0] : memref<256x32xf32, #tpu.memory_space<vmem>>, vector<256x32xf32>
    %c0_1 = arith.constant 0 : index
    %c0_2 = arith.constant 0 : index
    %1 = vector.load %arg2[%c0_1, %c0_2] : memref<32x512xf32, #tpu.memory_space<vmem>>, vector<32x512xf32>
    %cst = arith.constant dense<0.000000e+00> : vector<256x512xf32>
    %2 = tpu.matmul %0, %1, %cst {dimension_numbers = #tpu.dot_dimension_numbers<[1], [0], [0], [1], [0, 0, 1, 1], [], []>} : vector<256x32xf32>, vector<32x512xf32>, vector<256x512xf32> -> vector<256x512xf32>
    %3 = vector.extract_strided_slice %2 {offsets = [0, 0], sizes = [256, 128], strides = [1, 1]} : vector<256x512xf32> to vector<256x128xf32>
    %4 = arith.truncf %3 : vector<256x128xf32> to vector<256x128xbf16>
    %c0_3 = arith.constant 0 : index
    %c0_4 = arith.constant 0 : index
    %5 = vector.load %arg3[%c0_3, %c0_4] : memref<256x128xbf16, #tpu.memory_space<vmem>>, vector<256x128xbf16>
    tpu.vector_store %arg3[%c0_3, %c0_4], %4 {strides = array<i32>} : memref<256x128xbf16, #tpu.memory_space<vmem>>, vector<256x128xbf16>,
    %6 = vector.extract_strided_slice %2 {offsets = [0, 128], sizes = [256, 384], strides = [1, 1]} : vector<256x512xf32> to vector<256x384xf32>
    %c0_5 = arith.constant 0 : index
    %c0_6 = arith.constant 0 : index
    %7 = vector.load %arg4[%c0_5, %c0_6] : memref<256x384xf32, #tpu.memory_space<vmem>>, vector<256x384xf32>
    tpu.vector_store %arg4[%c0_5, %c0_6], %6 {strides = array<i32>} : memref<256x384xf32, #tpu.memory_space<vmem>>, vector<256x384xf32>,
    return
  }
  func.func @transform_0(%arg0: i32) -> (i32, i32) {
    %c0_i32 = arith.constant 0 : i32
    %c0_i32_0 = arith.constant 0 : i32
    return %arg0, %c0_i32 : i32, i32
  }
  func.func @transform_1(%arg0: i32) -> (i32, i32) {
    %c0_i32 = arith.constant 0 : i32
    %c0_i32_0 = arith.constant 0 : i32
    %c0_i32_1 = arith.constant 0 : i32
    return %c0_i32, %c0_i32_0 : i32, i32
  }
  func.func @transform_2(%arg0: i32) -> (i32, i32) {
    %c0_i32 = arith.constant 0 : i32
    %c0_i32_0 = arith.constant 0 : i32
    return %arg0, %c0_i32 : i32, i32
  }
  func.func @transform_3(%arg0: i32) -> (i32, i32) {
    %c0_i32 = arith.constant 0 : i32
    %c0_i32_0 = arith.constant 0 : i32
    return %arg0, %c0_i32 : i32, i32
  }
}

</mosaic_0001>

<bundles_post_ra>
// kernel: tpu_custom_call.1
= control target key start
LH: loop header
LB: loop body
LE: loop exit
PB: predicated region body
PF: predicated region fallthrough
CT: control target
= control target key end

     0   :  { %9 = vsyncpa [#allocation3], 0  ;;  %s2102_s0 = inlined_call_operand.vmem [shape: f32[512,32], index: 0, kind: input, shape index: {}]   ;;  %s2103_s1 = inlined_call_operand.vmem [shape: f32[32,512], index: 1, kind: input, shape index: {}]   ;;  %s2104_s2 = inlined_call_operand.hbm [shape: bf16[512,128], index: 2, kind: output, shape index: {0}]   ;;  %s2105_s3 = inlined_call_operand.hbm [shape: f32[512,384], index: 3, kind: output, shape index: {1}]  }
   0x1   :  { %11 = vsyncpa [#allocation3 + $0x1], 0 }
   0x2   :  { %12 = vsyncpa [#allocation5], 0 }
   0x3   :  { %14 = vsyncpa [#allocation5 + $0x1], 0  ;;  %s1638_s12 = smov 0   ;;  %s1640_s13 = smov 0  }
   0x4   :  { %s1642_s14 = smov 0   ;;  %s1644_s15 = smov 0  }
   0x5 LB: > { %s1659_s16 = sadd.s32 4294967295, %s1609_s15   ;;  %s1229_s17 = sadd.s32 4294967294, %s1609_s15   ;;  %s1609_s15 = sphi %s1644_s15, %s2111_s15   ;;  %s1605_s14 = sphi %s1642_s14, %s2110_s14   ;;  %s1601_s13 = sphi %s1640_s13, %s2109_s13   ;;  %s1597_s12 = sphi %s1638_s12, %s2108_s12  }
   0x6   : > { %s1663_s18 = sadd.s32 1, %s1609_s15   ;;  %s74_s19 = sadd.s32 1, %s1605_s14 }
   0x7   : > { %s71_s20 = ssub.s32 %s1609_s15, %s1663_s18  ;;  %p84_p0 = scmp.ne.s32.totalorder %s1605_s14, %s1601_s13 }
   0x8   : > { %p72_p1 = scmp.eq.s32.totalorder %s71_s20, 0  ;;  %p85_p2 = scmp.eq.s32.totalorder %s1659_s16, 1 }
   0x9   : > { %p90_p3 = scmp.ne.s32.totalorder %s1601_s13, %s1597_s12  ;;  %p91_p4 = scmp.eq.s32.totalorder %s1229_s17, 1 }
   0xa   : > { %s1674_s21 = scalar_select %p72_p1, %s1605_s14, %s74_s19  }
   0xb   : > { %p1676_p5 = por %p85_p2, %p84_p0  ;;  %p1680_p6 = por %p91_p4, %p90_p3 }
   0xc   : > { %p1232_p7 = scmp.ge.s32.totalorder %s1609_s15, 1  ;;  %p147_p8 = scmp.lt.s32.totalorder %s1609_s15, 3 }
   0xe   : > { %p148_p9 = pnand %p1232_p7, %p147_p8 }
   0xf   : > { %s1234_s30 = sshll.u32 (!%p148_p9), %s1659_s16, 5  ;;  %s1372_s4 = sshll.u32 (!%p148_p9), %s1659_s16, 11 }
  0x10   : > { %151 = sbr.rel (%p148_p9) target bundleno = 388 (0x184), region = 28  ;;  %p177_p10 = scmp.lt.s32.totalorder (!%p148_p9), %s1234_s30, 63 }
  0x11   : > { %s1469_s6 = smul.u32 (!%p148_p9), 12288, %s1659_s16  ;;  %s2024_s10 = scalar_lea.hbm (!%p148_p9), %s2104_s2, %s1372_s4 }
  0x12   : > { %s1612_s24 = smov (!%p148_p9), [#allocation2]  }
  0x13   : > { %s2032_s17 = scalar_lea.hbm (!%p148_p9), %s2105_s3, %s1469_s6 }
  0x15   : > { %v229_v0 = vld [vmem:[%s2103_s1 + $0x68] sm:$0xff]  ;;  %v231_v1 = vld [vmem:[%s2103_s1 + $0x78] sm:$0xff]  ;;  %v228_v2 = vld [vmem:[%s2103_s1 + $0x60] sm:$0xff]  ;;  %s2113_s30 = smov (!%p177_p10, %s1234_s30), 63  ;;  %vm232_vm0 = vcmask 261120   ;;  %v1611_v17 = vmov 0.0  }
  0x16   : > { %353 = vmatprep.subr.mxu0 %v229_v0  ;;  %610 = vmatprep.subr.mxu1 %v231_v1  ;;  %v230_v3 = vld [vmem:[%s2103_s1 + $0x70] sm:$0xff]  ;;  %v225_v4 = vld [vmem:[%s2103_s1 + $0x48] sm:$0xff]  ;;  %v227_v5 = vld [vmem:[%s2103_s1 + $0x58] sm:$0xff]  ;;  %s1235_s11 = sshll.u32 %s2113_s30, 3  ;;  %s1901_s30 = sand.u32 1, %s1601_s13  }
  0x17   : > { %354 = vmatpush1.msra.mxu0 %v228_v2  ;;  %611 = vmatpush1.msra.mxu1 %v230_v3  ;;  %v224_v6 = vld [vmem:[%s2103_s1 + $0x40] sm:$0xff]  ;;  %v226_v7 = vld [vmem:[%s2103_s1 + $0x50] sm:$0xff]  ;;  %v221_v8 = vld [vmem:[%s2103_s1 + $0x28] sm:$0xff]  ;;  %s1738_s25 = scalar_lea.vmem %s2102_s0, %s1235_s11  ;;  %s1468_s26 = smul.u32 768, %s1901_s30 }
  0x18   : > { %355 = vmatprep.subr.mxu0 %v225_v4  ;;  %612 = vmatprep.subr.mxu1 %v227_v5  ;;  %v223_v9 = vld [vmem:[%s2103_s1 + $0x38] sm:$0xff]  ;;  %v220_v10 = vld [vmem:[%s2103_s1 + $0x20] sm:$0xff]  ;;  %v222_v11 = vld [vmem:[%s2103_s1 + $0x30] sm:$0xff]  ;;  %s1233_s28 = sshll.u32 %s1901_s30, 7  ;;  %s1100_s19 = scalar_lea.sflag [#allocation3], %s1901_s30 }
  0x19   : > { %356 = vmatpush1.msra.mxu0 %v224_v6  ;;  %613 = vmatpush1.msra.mxu1 %v226_v7  ;;  %v217_v12 = vld [vmem:[%s2103_s1 + $0x8] sm:$0xff]  ;;  %v219_v13 = vld [vmem:[%s2103_s1 + $0x18] sm:$0xff]  ;;  %v216_v14 = vld [vmem:[%s2103_s1] sm:$0xff]  ;;  %s1904_s27 = scalar_lea.vmem [#allocation4], %s1468_s26  ;;  %s1911_s29 = scalar_lea.vmem [#allocation2], %s1233_s28 }
  0x1a   : > { %357 = vmatprep.subr.mxu0 %v221_v8  ;;  %614 = vmatprep.subr.mxu1 %v223_v9  ;;  %v218_v15 = vld [vmem:[%s2103_s1 + $0x10] sm:$0xff]  ;;  %v184_v16 = vld [vmem:[%s1738_s25] sm:$0xff]  ;;  %v185_v18 = vld [vmem:[%s1738_s25 + $0x8] sm:$0xff]  ;;  %s1118_s5 = sshll.u32 %s1911_s29, 4  ;;  %s1135_s7 = sshll.u32 %s1904_s27, 4  ;;  %s2026_s5 = int_to_ptr.vmem [resolvable:$true] %s1118_s5  ;;  %s2034_s7 = int_to_ptr.vmem [resolvable:$true] %s1135_s7 }
  0x1b   : > { %358 = vmatpush1.msra.mxu0 %v220_v10  ;;  %615 = vmatpush1.msra.mxu1 %v222_v11  ;;  %v186_v19 = vld [vmem:[%s1738_s25 + $0x10] sm:$0xff]  ;;  %v187_v20 = vld [vmem:[%s1738_s25 + $0x18] sm:$0xff]  ;;  %v188_v21 = vld [vmem:[%s1738_s25 + $0x20] sm:$0xff]  ;;  %s1519_s20 = scalar_lea.vmem %s2026_s5, 2048 }
  0x1c   : > { %359 = vmatprep.subr.mxu0 %v217_v12  ;;  %616 = vmatprep.subr.mxu1 %v219_v13  ;;  %v189_v22 = vld [vmem:[%s1738_s25 + $0x28] sm:$0xff]  ;;  %v190_v23 = vld [vmem:[%s1738_s25 + $0x30] sm:$0xff]  ;;  %v191_v24 = vld [vmem:[%s1738_s25 + $0x38] sm:$0xff]  ;;  %p1520_p11 = scmp.ne.s32.totalorder %s2026_s5, %s1519_s20 }
  0x1d   : > { %360 = vmatpush1.msra.mxu0 %v216_v14  ;;  %393 = vmatprep.mubr.f32.mxu0 %v1611_v17  ;;  %v192_v25 = vld [vmem:[%s1738_s25 + $0x40] sm:$0xff]  ;;  %v193_v26 = vld [vmem:[%s1738_s25 + $0x48] sm:$0xff]  ;;  %v194_v27 = vld [vmem:[%s1738_s25 + $0x50] sm:$0xff] }
  0x1e   : > { %617 = vmatpush1.msra.mxu1 %v218_v15  ;;  %650 = vmatprep.mubr.f32.mxu1 %v1611_v17  ;;  %v195_v28 = vld [vmem:[%s1738_s25 + $0x58] sm:$0xff]  ;;  %v196_v29 = vld [vmem:[%s1738_s25 + $0x60] sm:$0xff]  ;;  %v197_v30 = vld [vmem:[%s1738_s25 + $0x68] sm:$0xff]  ;;  %p1521_p12 = pnand %p1520_p11, %p1676_p5 }
  0x1f   : > { %1236 = vmatmul.mubr.msk.f32.vlgmr.msra.gmra.mxu0 %vm232_vm0, %v184_v16  ;;  %1268 = vmatmul.mubr.msk.f32.vlgmr.msra.gmra.mxu1 %vm232_vm0, %v184_v16  ;;  %v198_v31 = vld [vmem:[%s1738_s25 + $0x70] sm:$0xff]  ;;  %v199_v32 = vld [vmem:[%s1738_s25 + $0x78] sm:$0xff]  ;;  %v200_v33 = vld [vmem:[%s1738_s25 + $0x80] sm:$0xff] }
  0x20   : > { %399 = vmatprep.mubr.f32.mxu0 %v1611_v17  ;;  %656 = vmatprep.mubr.f32.mxu1 %v1611_v17  ;;  %v201_v34 = vld [vmem:[%s1738_s25 + $0x88] sm:$0xff]  ;;  %v202_v35 = vld [vmem:[%s1738_s25 + $0x90] sm:$0xff]  ;;  %v203_v36 = vld [vmem:[%s1738_s25 + $0x98] sm:$0xff]  ;;  %p1522_p13 = pneg %p1521_p12 }
  0x21   : > { %v204_v37 = vld [vmem:[%s1738_s25 + $0xa0] sm:$0xff]  ;;  %v205_v38 = vld [vmem:[%s1738_s25 + $0xa8] sm:$0xff]  ;;  %v206_v39 = vld [vmem:[%s1738_s25 + $0xb0] sm:$0xff] }
  0x22   : > { %v207_v40 = vld [vmem:[%s1738_s25 + $0xb8] sm:$0xff]  ;;  %v208_v41 = vld [vmem:[%s1738_s25 + $0xc0] sm:$0xff]  ;;  %v209_v42 = vld [vmem:[%s1738_s25 + $0xc8] sm:$0xff] }
  0x23   : > { %1237 = vmatmul.mubr.msk.f32.gmra.mxu0 %vm232_vm0, %v185_v18  ;;  %1269 = vmatmul.mubr.msk.f32.gmra.mxu1 %vm232_vm0, %v185_v18  ;;  %v210_v43 = vld [vmem:[%s1738_s25 + $0xd0] sm:$0xff]  ;;  %v211_v44 = vld [vmem:[%s1738_s25 + $0xd8] sm:$0xff]  ;;  %v212_v45 = vld [vmem:[%s1738_s25 + $0xe0] sm:$0xff] }
  0x24   : > { %405 = vmatprep.mubr.f32.mxu0 %v1611_v17  ;;  %662 = vmatprep.mubr.f32.mxu1 %v1611_v17  ;;  %v213_v46 = vld [vmem:[%s1738_s25 + $0xe8] sm:$0xff]  ;;  %v214_v47 = vld [vmem:[%s1738_s25 + $0xf0] sm:$0xff]  ;;  %v215_v48 = vld [vmem:[%s1738_s25 + $0xf8] sm:$0xff]  ;;  %s1523_s25 = sshll.u32 %s1612_s24, 4  ;;  %s1524_s25 = int_to_ptr.vmem [resolvable:$false] %s1523_s25 }
  0x25   : > { %s1525_s26 = scalar_lea.vmem %s1524_s25, 4096  ;;  %p1526_p0 = scmp.lt.s32.totalorder %s2026_s5, %s1524_s25 }
  0x26   : > { %p1527_p1 = scmp.lt.s32.totalorder %s1525_s26, %s1519_s20 }
  0x27   : > { %1238 = vmatmul.mubr.msk.f32.gmra.mxu0 %vm232_vm0, %v186_v19  ;;  %1270 = vmatmul.mubr.msk.f32.gmra.mxu1 %vm232_vm0, %v186_v19 }
  0x28   : > { %411 = vmatprep.mubr.f32.mxu0 %v1611_v17  ;;  %668 = vmatprep.mubr.f32.mxu1 %v1611_v17  ;;  %p1528_p2 = por %p1527_p1, %p1526_p0 }
  0x2a   : > { %p1529_p3 = pnand %p1528_p2, %p1522_p13 }
  0x2b   : > { %1239 = vmatmul.mubr.msk.f32.gmra.mxu0 %vm232_vm0, %v187_v20  ;;  %1271 = vmatmul.mubr.msk.f32.gmra.mxu1 %vm232_vm0, %v187_v20 }
  0x2c   : > { %417 = vmatprep.mubr.f32.mxu0 %v1611_v17  ;;  %674 = vmatprep.mubr.f32.mxu1 %v1611_v17 }
  0x2f   : > { %1240 = vmatmul.mubr.msk.f32.gmra.mxu0 %vm232_vm0, %v188_v21  ;;  %1272 = vmatmul.mubr.msk.f32.gmra.mxu1 %vm232_vm0, %v188_v21 }
  0x30   : > { %423 = vmatprep.mubr.f32.mxu0 %v1611_v17  ;;  %680 = vmatprep.mubr.f32.mxu1 %v1611_v17 }
  0x33   : > { %1241 = vmatmul.mubr.msk.f32.gmra.mxu0 %vm232_vm0, %v189_v22  ;;  %1273 = vmatmul.mubr.msk.f32.gmra.mxu1 %vm232_vm0, %v189_v22 }
  0x34   : > { %429 = vmatprep.mubr.f32.mxu0 %v1611_v17  ;;  %686 = vmatprep.mubr.f32.mxu1 %v1611_v17 }
  0x37   : > { %1242 = vmatmul.mubr.msk.f32.gmra.mxu0 %vm232_vm0, %v190_v23  ;;  %1274 = vmatmul.mubr.msk.f32.gmra.mxu1 %vm232_vm0, %v190_v23 }
  0x38   : > { %435 = vmatprep.mubr.f32.mxu0 %v1611_v17  ;;  %692 = vmatprep.mubr.f32.mxu1 %v1611_v17 }
  0x3b   : > { %1243 = vmatmul.mubr.msk.f32.gmra.mxu0 %vm232_vm0, %v191_v24  ;;  %1275 = vmatmul.mubr.msk.f32.gmra.mxu1 %vm232_vm0, %v191_v24 }
  0x3c   : > { %441 = vmatprep.mubr.f32.mxu0 %v1611_v17  ;;  %698 = vmatprep.mubr.f32.mxu1 %v1611_v17 }
  0x3f   : > { %1244 = vmatmul.mubr.msk.f32.gmra.mxu0 %vm232_vm0, %v192_v25  ;;  %1276 = vmatmul.mubr.msk.f32.gmra.mxu1 %vm232_vm0, %v192_v25 }
  0x40   : > { %447 = vmatprep.mubr.f32.mxu0 %v1611_v17  ;;  %704 = vmatprep.mubr.f32.mxu1 %v1611_v17 }
  0x43   : > { %1245 = vmatmul.mubr.msk.f32.gmra.mxu0 %vm232_vm0, %v193_v26  ;;  %1277 = vmatmul.mubr.msk.f32.gmra.mxu1 %vm232_vm0, %v193_v26 }
  0x44   : > { %453 = vmatprep.mubr.f32.mxu0 %v1611_v17  ;;  %710 = vmatprep.mubr.f32.mxu1 %v1611_v17 }
  0x47   : > { %1246 = vmatmul.mubr.msk.f32.gmra.mxu0 %vm232_vm0, %v194_v27  ;;  %1278 = vmatmul.mubr.msk.f32.gmra.mxu1 %vm232_vm0, %v194_v27 }
  0x48   : > { %459 = vmatprep.mubr.f32.mxu0 %v1611_v17  ;;  %716 = vmatprep.mubr.f32.mxu1 %v1611_v17 }
  0x4b   : > { %1247 = vmatmul.mubr.msk.f32.gmra.mxu0 %vm232_vm0, %v195_v28  ;;  %1279 = vmatmul.mubr.msk.f32.gmra.mxu1 %vm232_vm0, %v195_v28 }
  0x4c   : > { %465 = vmatprep.mubr.f32.mxu0 %v1611_v17  ;;  %722 = vmatprep.mubr.f32.mxu1 %v1611_v17 }
  0x4f   : > { %1248 = vmatmul.mubr.msk.f32.gmra.mxu0 %vm232_vm0, %v196_v29  ;;  %1280 = vmatmul.mubr.msk.f32.gmra.mxu1 %vm232_vm0, %v196_v29 }
  0x50   : > { %471 = vmatprep.mubr.f32.mxu0 %v1611_v17  ;;  %728 = vmatprep.mubr.f32.mxu1 %v1611_v17 }
  0x53   : > { %1249 = vmatmul.mubr.msk.f32.gmra.mxu0 %vm232_vm0, %v197_v30  ;;  %1281 = vmatmul.mubr.msk.f32.gmra.mxu1 %vm232_vm0, %v197_v30 }
  0x54   : > { %477 = vmatprep.mubr.f32.mxu0 %v1611_v17  ;;  %734 = vmatprep.mubr.f32.mxu1 %v1611_v17 }
  0x57   : > { %1250 = vmatmul.mubr.msk.f32.gmra.mxu0 %vm232_vm0, %v198_v31  ;;  %1282 = vmatmul.mubr.msk.f32.gmra.mxu1 %vm232_vm0, %v198_v31 }
  0x58   : > { %483 = vmatprep.mubr.f32.mxu0 %v1611_v17  ;;  %740 = vmatprep.mubr.f32.mxu1 %v1611_v17 }
  0x5b   : > { %1251 = vmatmul.mubr.msk.f32.gmra.mxu0 %vm232_vm0, %v199_v32  ;;  %1283 = vmatmul.mubr.msk.f32.gmra.mxu1 %vm232_vm0, %v199_v32 }
  0x5c   : > { %489 = vmatprep.mubr.f32.mxu0 %v1611_v17  ;;  %746 = vmatprep.mubr.f32.mxu1 %v1611_v17 }
  0x5f   : > { %1252 = vmatmul.mubr.msk.f32.gmra.mxu0 %vm232_vm0, %v200_v33  ;;  %1284 = vmatmul.mubr.msk.f32.gmra.mxu1 %vm232_vm0, %v200_v33 }
  0x60   : > { %495 = vmatprep.mubr.f32.mxu0 %v1611_v17  ;;  %752 = vmatprep.mubr.f32.mxu1 %v1611_v17 }
  0x63   : > { %1253 = vmatmul.mubr.msk.f32.gmra.mxu0 %vm232_vm0, %v201_v34  ;;  %1285 = vmatmul.mubr.msk.f32.gmra.mxu1 %vm232_vm0, %v201_v34 }
  0x64   : > { %501 = vmatprep.mubr.f32.mxu0 %v1611_v17  ;;  %758 = vmatprep.mubr.f32.mxu1 %v1611_v17 }
  0x67   : > { %1254 = vmatmul.mubr.msk.f32.gmra.mxu0 %vm232_vm0, %v202_v35  ;;  %1286 = vmatmul.mubr.msk.f32.gmra.mxu1 %vm232_vm0, %v202_v35 }
  0x68   : > { %507 = vmatprep.mubr.f32.mxu0 %v1611_v17  ;;  %764 = vmatprep.mubr.f32.mxu1 %v1611_v17 }
  0x6b   : > { %1255 = vmatmul.mubr.msk.f32.gmra.mxu0 %vm232_vm0, %v203_v36  ;;  %1287 = vmatmul.mubr.msk.f32.gmra.mxu1 %vm232_vm0, %v203_v36 }
  0x6c   : > { %513 = vmatprep.mubr.f32.mxu0 %v1611_v17  ;;  %770 = vmatprep.mubr.f32.mxu1 %v1611_v17 }
  0x6f   : > { %1256 = vmatmul.mubr.msk.f32.gmra.mxu0 %vm232_vm0, %v204_v37  ;;  %1288 = vmatmul.mubr.msk.f32.gmra.mxu1 %vm232_vm0, %v204_v37 }
  0x70   : > { %519 = vmatprep.mubr.f32.mxu0 %v1611_v17  ;;  %776 = vmatprep.mubr.f32.mxu1 %v1611_v17 }
  0x73   : > { %1257 = vmatmul.mubr.msk.f32.gmra.mxu0 %vm232_vm0, %v205_v38  ;;  %1289 = vmatmul.mubr.msk.f32.gmra.mxu1 %vm232_vm0, %v205_v38 }
  0x74   : > { %525 = vmatprep.mubr.f32.mxu0 %v1611_v17  ;;  %782 = vmatprep.mubr.f32.mxu1 %v1611_v17 }
  0x77   : > { %1258 = vmatmul.mubr.msk.f32.gmra.mxu0 %vm232_vm0, %v206_v39  ;;  %1290 = vmatmul.mubr.msk.f32.gmra.mxu1 %vm232_vm0, %v206_v39 }
  0x78   : > { %531 = vmatprep.mubr.f32.mxu0 %v1611_v17  ;;  %788 = vmatprep.mubr.f32.mxu1 %v1611_v17 }
  0x7b   : > { %1259 = vmatmul.mubr.msk.f32.gmra.mxu0 %vm232_vm0, %v207_v40  ;;  %1291 = vmatmul.mubr.msk.f32.gmra.mxu1 %vm232_vm0, %v207_v40 }
  0x7c   : > { %537 = vmatprep.mubr.f32.mxu0 %v1611_v17  ;;  %794 = vmatprep.mubr.f32.mxu1 %v1611_v17 }
  0x7f   : > { %1260 = vmatmul.mubr.msk.f32.gmra.mxu0 %vm232_vm0, %v208_v41  ;;  %1292 = vmatmul.mubr.msk.f32.gmra.mxu1 %vm232_vm0, %v208_v41 }
  0x80   : > { %543 = vmatprep.mubr.f32.mxu0 %v1611_v17  ;;  %800 = vmatprep.mubr.f32.mxu1 %v1611_v17 }
  0x83   : > { %1261 = vmatmul.mubr.msk.f32.gmra.mxu0 %vm232_vm0, %v209_v42  ;;  %1293 = vmatmul.mubr.msk.f32.gmra.mxu1 %vm232_vm0, %v209_v42 }
  0x84   : > { %549 = vmatprep.mubr.f32.mxu0 %v1611_v17  ;;  %806 = vmatprep.mubr.f32.mxu1 %v1611_v17 }
  0x87   : > { %1262 = vmatmul.mubr.msk.f32.gmra.mxu0 %vm232_vm0, %v210_v43  ;;  %1294 = vmatmul.mubr.msk.f32.gmra.mxu1 %vm232_vm0, %v210_v43 }
  0x88   : > { %555 = vmatprep.mubr.f32.mxu0 %v1611_v17  ;;  %812 = vmatprep.mubr.f32.mxu1 %v1611_v17 }
  0x8b   : > { %1263 = vmatmul.mubr.msk.f32.gmra.mxu0 %vm232_vm0, %v211_v44  ;;  %1295 = vmatmul.mubr.msk.f32.gmra.mxu1 %vm232_vm0, %v211_v44 }
  0x8c   : > { %561 = vmatprep.mubr.f32.mxu0 %v1611_v17  ;;  %818 = vmatprep.mubr.f32.mxu1 %v1611_v17 }
  0x8f   : > { %1264 = vmatmul.mubr.msk.f32.gmra.mxu0 %vm232_vm0, %v212_v45  ;;  %1296 = vmatmul.mubr.msk.f32.gmra.mxu1 %vm232_vm0, %v212_v45 }
  0x90   : > { %567 = vmatprep.mubr.f32.mxu0 %v1611_v17  ;;  %824 = vmatprep.mubr.f32.mxu1 %v1611_v17 }
  0x93   : > { %1265 = vmatmul.mubr.msk.f32.gmra.mxu0 %vm232_vm0, %v213_v46  ;;  %1297 = vmatmul.mubr.msk.f32.gmra.mxu1 %vm232_vm0, %v213_v46 }
  0x94   : > { %573 = vmatprep.mubr.f32.mxu0 %v1611_v17  ;;  %830 = vmatprep.mubr.f32.mxu1 %v1611_v17 }
  0x97   : > { %1266 = vmatmul.mubr.msk.f32.gmra.mxu0 %vm232_vm0, %v214_v47  ;;  %1298 = vmatmul.mubr.msk.f32.gmra.mxu1 %vm232_vm0, %v214_v47 }
  0x98   : > { %579 = vmatprep.mubr.f32.mxu0 %v1611_v17  ;;  %836 = vmatprep.mubr.f32.mxu1 %v1611_v17 }
  0x9b   : > { %1267 = vmatmul.mubr.msk.f32.gmra.mxu0 %vm232_vm0, %v215_v48  ;;  %1299 = vmatmul.mubr.msk.f32.gmra.mxu1 %vm232_vm0, %v215_v48 }
  0xdf   : > { %v395_v49 = vpop.f32.mrf.mxu0  ;;  %v652_v50 = vpop.f32.mrf.mxu1 }
  0xe0   : > { %1004 = vst [vmem:[%s1904_s27 + $0x8] sm:$0xff] %v652_v50 }
  0xe1   : > { %v397_v51 = vpop.f32.mrf.mxu0  ;;  %v654_v52 = vpop.f32.mrf.mxu1 }
  0xe2   : > { %1003 = vst [vmem:[%s1904_s27] sm:$0xff] %v397_v51  ;;  %1005 = vst [vmem:[%s1904_s27 + $0x10] sm:$0xff] %v654_v52 }
  0xe3   : > { %v401_v53 = vpop.f32.mrf.mxu0  ;;  %v658_v54 = vpop.f32.mrf.mxu1 }
  0xe4   : > { %v1376_v55 = vpack.c.bf16 %v401_v53, %v395_v49  ;;  %1007 = vst [vmem:[%s1904_s27 + $0x20] sm:$0xff] %v658_v54 }
  0xe5   : > { %v403_v56 = vpop.f32.mrf.mxu0  ;;  %v660_v57 = vpop.f32.mrf.mxu1 }
  0xe6   : > { %1377 = vst [vmem:[%s1911_s29] sm:$0xff] %v1376_v55   ;;  %1006 = vst [vmem:[%s1904_s27 + $0x18] sm:$0xff] %v403_v56 }
  0xe7   : > { %1008 = vst [vmem:[%s1904_s27 + $0x28] sm:$0xff] %v660_v57  ;;  %v407_v58 = vpop.f32.mrf.mxu0  ;;  %v664_v59 = vpop.f32.mrf.mxu1 }
  0xe8   : > { %1010 = vst [vmem:[%s1904_s27 + $0x38] sm:$0xff] %v664_v59 }
  0xe9   : > { %v409_v60 = vpop.f32.mrf.mxu0  ;;  %v666_v61 = vpop.f32.mrf.mxu1 }
  0xea   : > { %1009 = vst [vmem:[%s1904_s27 + $0x30] sm:$0xff] %v409_v60  ;;  %1011 = vst [vmem:[%s1904_s27 + $0x40] sm:$0xff] %v666_v61 }
  0xeb   : > { %v413_v62 = vpop.f32.mrf.mxu0  ;;  %v670_v63 = vpop.f32.mrf.mxu1 }
  0xec   : > { %v1381_v0 = vpack.c.bf16 %v413_v62, %v407_v58  ;;  %1013 = vst [vmem:[%s1904_s27 + $0x50] sm:$0xff] %v670_v63 }
  0xed   : > { %v415_v1 = vpop.f32.mrf.mxu0  ;;  %v672_v2 = vpop.f32.mrf.mxu1 }
  0xee   : > { %1453 = vst [vmem:[%s1911_s29 + $0x8] sm:$0xff] %v1381_v0   ;;  %1012 = vst [vmem:[%s1904_s27 + $0x48] sm:$0xff] %v415_v1 }
  0xef   : > { %1014 = vst [vmem:[%s1904_s27 + $0x58] sm:$0xff] %v672_v2  ;;  %v419_v3 = vpop.f32.mrf.mxu0  ;;  %v676_v4 = vpop.f32.mrf.mxu1 }
  0xf0   : > { %1016 = vst [vmem:[%s1904_s27 + $0x68] sm:$0xff] %v676_v4 }
  0xf1   : > { %v421_v5 = vpop.f32.mrf.mxu0  ;;  %v678_v6 = vpop.f32.mrf.mxu1 }
  0xf2   : > { %1015 = vst [vmem:[%s1904_s27 + $0x60] sm:$0xff] %v421_v5  ;;  %1017 = vst [vmem:[%s1904_s27 + $0x70] sm:$0xff] %v678_v6 }
  0xf3   : > { %v425_v7 = vpop.f32.mrf.mxu0  ;;  %v682_v8 = vpop.f32.mrf.mxu1 }
  0xf4   : > { %v1386_v9 = vpack.c.bf16 %v425_v7, %v419_v3  ;;  %1019 = vst [vmem:[%s1904_s27 + $0x80] sm:$0xff] %v682_v8 }
  0xf5   : > { %v427_v10 = vpop.f32.mrf.mxu0  ;;  %v684_v11 = vpop.f32.mrf.mxu1 }
  0xf6   : > { %1454 = vst [vmem:[%s1911_s29 + $0x10] sm:$0xff] %v1386_v9   ;;  %1018 = vst [vmem:[%s1904_s27 + $0x78] sm:$0xff] %v427_v10 }
  0xf7   : > { %1020 = vst [vmem:[%s1904_s27 + $0x88] sm:$0xff] %v684_v11  ;;  %v431_v12 = vpop.f32.mrf.mxu0  ;;  %v688_v13 = vpop.f32.mrf.mxu1 }
  0xf8   : > { %1022 = vst [vmem:[%s1904_s27 + $0x98] sm:$0xff] %v688_v13 }
  0xf9   : > { %v433_v14 = vpop.f32.mrf.mxu0  ;;  %v690_v15 = vpop.f32.mrf.mxu1 }
  0xfa   : > { %1021 = vst [vmem:[%s1904_s27 + $0x90] sm:$0xff] %v433_v14  ;;  %1023 = vst [vmem:[%s1904_s27 + $0xa0] sm:$0xff] %v690_v15 }
  0xfb   : > { %v437_v16 = vpop.f32.mrf.mxu0  ;;  %v694_v17 = vpop.f32.mrf.mxu1 }
  0xfc   : > { %v1391_v18 = vpack.c.bf16 %v437_v16, %v431_v12  ;;  %1025 = vst [vmem:[%s1904_s27 + $0xb0] sm:$0xff] %v694_v17 }
  0xfd   : > { %v439_v19 = vpop.f32.mrf.mxu0  ;;  %v696_v20 = vpop.f32.mrf.mxu1 }
  0xfe   : > { %1455 = vst [vmem:[%s1911_s29 + $0x18] sm:$0xff] %v1391_v18   ;;  %1024 = vst [vmem:[%s1904_s27 + $0xa8] sm:$0xff] %v439_v19 }
  0xff   : > { %1026 = vst [vmem:[%s1904_s27 + $0xb8] sm:$0xff] %v696_v20  ;;  %v443_v21 = vpop.f32.mrf.mxu0  ;;  %v700_v22 = vpop.f32.mrf.mxu1 }
 0x100   : > { %1028 = vst [vmem:[%s1904_s27 + $0xc8] sm:$0xff] %v700_v22 }
 0x101   : > { %v445_v23 = vpop.f32.mrf.mxu0  ;;  %v702_v24 = vpop.f32.mrf.mxu1 }
 0x102   : > { %1027 = vst [vmem:[%s1904_s27 + $0xc0] sm:$0xff] %v445_v23  ;;  %1029 = vst [vmem:[%s1904_s27 + $0xd0] sm:$0xff] %v702_v24 }
 0x103   : > { %v449_v25 = vpop.f32.mrf.mxu0  ;;  %v706_v26 = vpop.f32.mrf.mxu1 }
 0x104   : > { %v1396_v27 = vpack.c.bf16 %v449_v25, %v443_v21  ;;  %1031 = vst [vmem:[%s1904_s27 + $0xe0] sm:$0xff] %v706_v26 }
 0x105   : > { %v451_v28 = vpop.f32.mrf.mxu0  ;;  %v708_v29 = vpop.f32.mrf.mxu1 }
 0x106   : > { %1456 = vst [vmem:[%s1911_s29 + $0x20] sm:$0xff] %v1396_v27   ;;  %1030 = vst [vmem:[%s1904_s27 + $0xd8] sm:$0xff] %v451_v28 }
 0x107   : > { %1032 = vst [vmem:[%s1904_s27 + $0xe8] sm:$0xff] %v708_v29  ;;  %v455_v30 = vpop.f32.mrf.mxu0  ;;  %v712_v31 = vpop.f32.mrf.mxu1 }
 0x108   : > { %1034 = vst [vmem:[%s1904_s27 + $0xf8] sm:$0xff] %v712_v31 }
 0x109   : > { %v457_v32 = vpop.f32.mrf.mxu0  ;;  %v714_v33 = vpop.f32.mrf.mxu1 }
 0x10a   : > { %1033 = vst [vmem:[%s1904_s27 + $0xf0] sm:$0xff] %v457_v32  ;;  %1035 = vst [vmem:[%s1904_s27 + $0x100] sm:$0xff] %v714_v33 }
 0x10b   : > { %v461_v34 = vpop.f32.mrf.mxu0  ;;  %v718_v35 = vpop.f32.mrf.mxu1 }
 0x10c   : > { %v1401_v36 = vpack.c.bf16 %v461_v34, %v455_v30  ;;  %1037 = vst [vmem:[%s1904_s27 + $0x110] sm:$0xff] %v718_v35 }
 0x10d   : > { %v463_v37 = vpop.f32.mrf.mxu0  ;;  %v720_v38 = vpop.f32.mrf.mxu1 }
 0x10e   : > { %1457 = vst [vmem:[%s1911_s29 + $0x28] sm:$0xff] %v1401_v36   ;;  %1036 = vst [vmem:[%s1904_s27 + $0x108] sm:$0xff] %v463_v37 }
 0x10f   : > { %1038 = vst [vmem:[%s1904_s27 + $0x118] sm:$0xff] %v720_v38  ;;  %v467_v39 = vpop.f32.mrf.mxu0  ;;  %v724_v40 = vpop.f32.mrf.mxu1 }
 0x110   : > { %1040 = vst [vmem:[%s1904_s27 + $0x128] sm:$0xff] %v724_v40 }
 0x111   : > { %v469_v41 = vpop.f32.mrf.mxu0  ;;  %v726_v42 = vpop.f32.mrf.mxu1 }
 0x112   : > { %1039 = vst [vmem:[%s1904_s27 + $0x120] sm:$0xff] %v469_v41  ;;  %1041 = vst [vmem:[%s1904_s27 + $0x130] sm:$0xff] %v726_v42 }
 0x113   : > { %v473_v43 = vpop.f32.mrf.mxu0  ;;  %v730_v44 = vpop.f32.mrf.mxu1 }
 0x114   : > { %v1406_v45 = vpack.c.bf16 %v473_v43, %v467_v39  ;;  %1043 = vst [vmem:[%s1904_s27 + $0x140] sm:$0xff] %v730_v44 }
 0x115   : > { %v475_v46 = vpop.f32.mrf.mxu0  ;;  %v732_v47 = vpop.f32.mrf.mxu1 }
 0x116   : > { %1458 = vst [vmem:[%s1911_s29 + $0x30] sm:$0xff] %v1406_v45   ;;  %1042 = vst [vmem:[%s1904_s27 + $0x138] sm:$0xff] %v475_v46 }
 0x117   : > { %1044 = vst [vmem:[%s1904_s27 + $0x148] sm:$0xff] %v732_v47  ;;  %v479_v48 = vpop.f32.mrf.mxu0  ;;  %v736_v49 = vpop.f32.mrf.mxu1 }
 0x118   : > { %1046 = vst [vmem:[%s1904_s27 + $0x158] sm:$0xff] %v736_v49 }
 0x119   : > { %v481_v50 = vpop.f32.mrf.mxu0  ;;  %v738_v51 = vpop.f32.mrf.mxu1 }
 0x11a   : > { %1045 = vst [vmem:[%s1904_s27 + $0x150] sm:$0xff] %v481_v50  ;;  %1047 = vst [vmem:[%s1904_s27 + $0x160] sm:$0xff] %v738_v51 }
 0x11b   : > { %v485_v52 = vpop.f32.mrf.mxu0  ;;  %v742_v53 = vpop.f32.mrf.mxu1 }
 0x11c   : > { %v1411_v54 = vpack.c.bf16 %v485_v52, %v479_v48  ;;  %1049 = vst [vmem:[%s1904_s27 + $0x170] sm:$0xff] %v742_v53 }
 0x11d   : > { %v487_v55 = vpop.f32.mrf.mxu0  ;;  %v744_v56 = vpop.f32.mrf.mxu1 }
 0x11e   : > { %1459 = vst [vmem:[%s1911_s29 + $0x38] sm:$0xff] %v1411_v54   ;;  %1048 = vst [vmem:[%s1904_s27 + $0x168] sm:$0xff] %v487_v55 }
 0x11f   : > { %1050 = vst [vmem:[%s1904_s27 + $0x178] sm:$0xff] %v744_v56  ;;  %v491_v57 = vpop.f32.mrf.mxu0  ;;  %v748_v58 = vpop.f32.mrf.mxu1 }
 0x120   : > { %1052 = vst [vmem:[%s1904_s27 + $0x188] sm:$0xff] %v748_v58 }
 0x121   : > { %v493_v59 = vpop.f32.mrf.mxu0  ;;  %v750_v60 = vpop.f32.mrf.mxu1 }
 0x122   : > { %1051 = vst [vmem:[%s1904_s27 + $0x180] sm:$0xff] %v493_v59  ;;  %1053 = vst [vmem:[%s1904_s27 + $0x190] sm:$0xff] %v750_v60 }
 0x123   : > { %v497_v61 = vpop.f32.mrf.mxu0  ;;  %v754_v62 = vpop.f32.mrf.mxu1 }
 0x124   : > { %v1416_v63 = vpack.c.bf16 %v497_v61, %v491_v57  ;;  %1055 = vst [vmem:[%s1904_s27 + $0x1a0] sm:$0xff] %v754_v62 }
 0x125   : > { %v499_v0 = vpop.f32.mrf.mxu0  ;;  %v756_v1 = vpop.f32.mrf.mxu1 }
 0x126   : > { %1460 = vst [vmem:[%s1911_s29 + $0x40] sm:$0xff] %v1416_v63   ;;  %1054 = vst [vmem:[%s1904_s27 + $0x198] sm:$0xff] %v499_v0 }
 0x127   : > { %1056 = vst [vmem:[%s1904_s27 + $0x1a8] sm:$0xff] %v756_v1  ;;  %v503_v2 = vpop.f32.mrf.mxu0  ;;  %v760_v3 = vpop.f32.mrf.mxu1 }
 0x128   : > { %1058 = vst [vmem:[%s1904_s27 + $0x1b8] sm:$0xff] %v760_v3 }
 0x129   : > { %v505_v4 = vpop.f32.mrf.mxu0  ;;  %v762_v5 = vpop.f32.mrf.mxu1 }
 0x12a   : > { %1057 = vst [vmem:[%s1904_s27 + $0x1b0] sm:$0xff] %v505_v4  ;;  %1059 = vst [vmem:[%s1904_s27 + $0x1c0] sm:$0xff] %v762_v5 }
 0x12b   : > { %v509_v6 = vpop.f32.mrf.mxu0  ;;  %v766_v7 = vpop.f32.mrf.mxu1 }
 0x12c   : > { %v1421_v8 = vpack.c.bf16 %v509_v6, %v503_v2  ;;  %1061 = vst [vmem:[%s1904_s27 + $0x1d0] sm:$0xff] %v766_v7 }
 0x12d   : > { %v511_v9 = vpop.f32.mrf.mxu0  ;;  %v768_v10 = vpop.f32.mrf.mxu1 }
 0x12e   : > { %1461 = vst [vmem:[%s1911_s29 + $0x48] sm:$0xff] %v1421_v8   ;;  %1060 = vst [vmem:[%s1904_s27 + $0x1c8] sm:$0xff] %v511_v9 }
 0x12f   : > { %1062 = vst [vmem:[%s1904_s27 + $0x1d8] sm:$0xff] %v768_v10  ;;  %v515_v11 = vpop.f32.mrf.mxu0  ;;  %v772_v12 = vpop.f32.mrf.mxu1 }
 0x130   : > { %1064 = vst [vmem:[%s1904_s27 + $0x1e8] sm:$0xff] %v772_v12 }
 0x131   : > { %v517_v13 = vpop.f32.mrf.mxu0  ;;  %v774_v14 = vpop.f32.mrf.mxu1 }
 0x132   : > { %1063 = vst [vmem:[%s1904_s27 + $0x1e0] sm:$0xff] %v517_v13  ;;  %1065 = vst [vmem:[%s1904_s27 + $0x1f0] sm:$0xff] %v774_v14 }
 0x133   : > { %v521_v15 = vpop.f32.mrf.mxu0  ;;  %v778_v16 = vpop.f32.mrf.mxu1 }
 0x134   : > { %v1426_v17 = vpack.c.bf16 %v521_v15, %v515_v11  ;;  %1067 = vst [vmem:[%s1904_s27 + $0x200] sm:$0xff] %v778_v16 }
 0x135   : > { %v523_v18 = vpop.f32.mrf.mxu0  ;;  %v780_v19 = vpop.f32.mrf.mxu1 }
 0x136   : > { %1462 = vst [vmem:[%s1911_s29 + $0x50] sm:$0xff] %v1426_v17   ;;  %1066 = vst [vmem:[%s1904_s27 + $0x1f8] sm:$0xff] %v523_v18 }
 0x137   : > { %1068 = vst [vmem:[%s1904_s27 + $0x208] sm:$0xff] %v780_v19  ;;  %v527_v20 = vpop.f32.mrf.mxu0  ;;  %v784_v21 = vpop.f32.mrf.mxu1 }
 0x138   : > { %1070 = vst [vmem:[%s1904_s27 + $0x218] sm:$0xff] %v784_v21 }
 0x139   : > { %v529_v22 = vpop.f32.mrf.mxu0  ;;  %v786_v23 = vpop.f32.mrf.mxu1 }
 0x13a   : > { %1069 = vst [vmem:[%s1904_s27 + $0x210] sm:$0xff] %v529_v22  ;;  %1071 = vst [vmem:[%s1904_s27 + $0x220] sm:$0xff] %v786_v23 }
 0x13b   : > { %v533_v24 = vpop.f32.mrf.mxu0  ;;  %v790_v25 = vpop.f32.mrf.mxu1 }
 0x13c   : > { %v1431_v26 = vpack.c.bf16 %v533_v24, %v527_v20  ;;  %1073 = vst [vmem:[%s1904_s27 + $0x230] sm:$0xff] %v790_v25 }
 0x13d   : > { %v535_v27 = vpop.f32.mrf.mxu0  ;;  %v792_v28 = vpop.f32.mrf.mxu1 }
 0x13e   : > { %1463 = vst [vmem:[%s1911_s29 + $0x58] sm:$0xff] %v1431_v26   ;;  %1072 = vst [vmem:[%s1904_s27 + $0x228] sm:$0xff] %v535_v27 }
 0x13f   : > { %1074 = vst [vmem:[%s1904_s27 + $0x238] sm:$0xff] %v792_v28  ;;  %v539_v29 = vpop.f32.mrf.mxu0  ;;  %v796_v30 = vpop.f32.mrf.mxu1 }
 0x140   : > { %1076 = vst [vmem:[%s1904_s27 + $0x248] sm:$0xff] %v796_v30 }
 0x141   : > { %v541_v31 = vpop.f32.mrf.mxu0  ;;  %v798_v32 = vpop.f32.mrf.mxu1 }
 0x142   : > { %1075 = vst [vmem:[%s1904_s27 + $0x240] sm:$0xff] %v541_v31  ;;  %1077 = vst [vmem:[%s1904_s27 + $0x250] sm:$0xff] %v798_v32 }
 0x143   : > { %v545_v33 = vpop.f32.mrf.mxu0  ;;  %v802_v34 = vpop.f32.mrf.mxu1 }
 0x144   : > { %v1436_v35 = vpack.c.bf16 %v545_v33, %v539_v29  ;;  %1079 = vst [vmem:[%s1904_s27 + $0x260] sm:$0xff] %v802_v34 }
 0x145   : > { %v547_v36 = vpop.f32.mrf.mxu0  ;;  %v804_v37 = vpop.f32.mrf.mxu1 }
 0x146   : > { %1464 = vst [vmem:[%s1911_s29 + $0x60] sm:$0xff] %v1436_v35   ;;  %1078 = vst [vmem:[%s1904_s27 + $0x258] sm:$0xff] %v547_v36 }
 0x147   : > { %1080 = vst [vmem:[%s1904_s27 + $0x268] sm:$0xff] %v804_v37  ;;  %v551_v38 = vpop.f32.mrf.mxu0  ;;  %v808_v39 = vpop.f32.mrf.mxu1 }
 0x148   : > { %1082 = vst [vmem:[%s1904_s27 + $0x278] sm:$0xff] %v808_v39 }
 0x149   : > { %v553_v40 = vpop.f32.mrf.mxu0  ;;  %v810_v41 = vpop.f32.mrf.mxu1 }
 0x14a   : > { %1081 = vst [vmem:[%s1904_s27 + $0x270] sm:$0xff] %v553_v40  ;;  %1083 = vst [vmem:[%s1904_s27 + $0x280] sm:$0xff] %v810_v41 }
 0x14b   : > { %v557_v42 = vpop.f32.mrf.mxu0  ;;  %v814_v43 = vpop.f32.mrf.mxu1 }
 0x14c   : > { %v1441_v44 = vpack.c.bf16 %v557_v42, %v551_v38  ;;  %1085 = vst [vmem:[%s1904_s27 + $0x290] sm:$0xff] %v814_v43 }
 0x14d   : > { %v559_v45 = vpop.f32.mrf.mxu0  ;;  %v816_v46 = vpop.f32.mrf.mxu1 }
 0x14e   : > { %1465 = vst [vmem:[%s1911_s29 + $0x68] sm:$0xff] %v1441_v44   ;;  %1084 = vst [vmem:[%s1904_s27 + $0x288] sm:$0xff] %v559_v45 }
 0x14f   : > { %1086 = vst [vmem:[%s1904_s27 + $0x298] sm:$0xff] %v816_v46  ;;  %v563_v47 = vpop.f32.mrf.mxu0  ;;  %v820_v48 = vpop.f32.mrf.mxu1 }
 0x150   : > { %1088 = vst [vmem:[%s1904_s27 + $0x2a8] sm:$0xff] %v820_v48 }
 0x151   : > { %v565_v49 = vpop.f32.mrf.mxu0  ;;  %v822_v50 = vpop.f32.mrf.mxu1 }
 0x152   : > { %1087 = vst [vmem:[%s1904_s27 + $0x2a0] sm:$0xff] %v565_v49  ;;  %1089 = vst [vmem:[%s1904_s27 + $0x2b0] sm:$0xff] %v822_v50 }
 0x153   : > { %v569_v51 = vpop.f32.mrf.mxu0  ;;  %v826_v52 = vpop.f32.mrf.mxu1 }
 0x154   : > { %v1446_v53 = vpack.c.bf16 %v569_v51, %v563_v47  ;;  %1091 = vst [vmem:[%s1904_s27 + $0x2c0] sm:$0xff] %v826_v52 }
 0x155   : > { %v571_v54 = vpop.f32.mrf.mxu0  ;;  %v828_v55 = vpop.f32.mrf.mxu1 }
 0x156   : > { %1466 = vst [vmem:[%s1911_s29 + $0x70] sm:$0xff] %v1446_v53   ;;  %1090 = vst [vmem:[%s1904_s27 + $0x2b8] sm:$0xff] %v571_v54 }
 0x157   : > { %1092 = vst [vmem:[%s1904_s27 + $0x2c8] sm:$0xff] %v828_v55  ;;  %v575_v56 = vpop.f32.mrf.mxu0  ;;  %v832_v57 = vpop.f32.mrf.mxu1 }
 0x158   : > { %1094 = vst [vmem:[%s1904_s27 + $0x2d8] sm:$0xff] %v832_v57 }
 0x159   : > { %v577_v58 = vpop.f32.mrf.mxu0  ;;  %v834_v59 = vpop.f32.mrf.mxu1 }
 0x15a   : > { %1093 = vst [vmem:[%s1904_s27 + $0x2d0] sm:$0xff] %v577_v58  ;;  %1095 = vst [vmem:[%s1904_s27 + $0x2e0] sm:$0xff] %v834_v59 }
 0x15b   : > { %v581_v60 = vpop.f32.mrf.mxu0  ;;  %v838_v61 = vpop.f32.mrf.mxu1 }
 0x15c   : > { %v1451_v62 = vpack.c.bf16 %v581_v60, %v575_v56  ;;  %1097 = vst [vmem:[%s1904_s27 + $0x2f0] sm:$0xff] %v838_v61 }
 0x15d   : > { %v583_v63 = vpop.f32.mrf.mxu0  ;;  %v840_v0 = vpop.f32.mrf.mxu1 }
 0x15e   : > { %1467 = vst [vmem:[%s1911_s29 + $0x78] sm:$0xff] %v1451_v62   ;;  %1096 = vst [vmem:[%s1904_s27 + $0x2e8] sm:$0xff] %v583_v63 }
 0x15f   : > { %1098 = vst [vmem:[%s1904_s27 + $0x2f8] sm:$0xff] %v840_v0 }
 0x160   : > { %1532 = shalt.err (!%p1529_p3)
}
 0x161   : > { %s1533_s27 = scalar_lea.hbm %s2024_s10, 2048  ;;  %s1537_s4 = scalar_lea.hbm %s2104_s2, 4096 }
 0x162   : > { %p1534_p4 = scmp.ne.s32.totalorder %s2024_s10, %s1533_s27  ;;  %p1538_p9 = scmp.lt.s32.totalorder %s2024_s10, %s2104_s2 }
 0x163   : > { %p1539_p10 = scmp.lt.s32.totalorder %s1537_s4, %s1533_s27 }
 0x164   : > { %p1535_p7 = pnand %p1534_p4, %p1676_p5 }
 0x165   : > { %p1540_p11 = por %p1539_p10, %p1538_p9 }
 0x166   : > { %p1536_p8 = pneg %p1535_p7 }
 0x168   : > { %p1541_p12 = pnand %p1540_p11, %p1536_p8 }
 0x16a   : > { %1544 = shalt.err (!%p1541_p12)
}
 0x16b   : > { %s1613_s9 = smov 64   ;;  %s1614_s16 = smov 4  }
 0x16c   : > { %1470 = dma.vmem_to_hbm [thread:$0]  (%p1676_p5), %s2026_s5, 2048, %s2024_s10, %s1100_s19, %s1613_s9, %s1613_s9, %s1614_s16  }
 0x16d   : > { %s1105_s11 = scalar_lea.sflag [#allocation5], %s1901_s30  ;;  %s1545_s20 = scalar_lea.vmem %s2034_s7, 12288 }
 0x16e   : > { %p1546_p13 = scmp.ne.s32.totalorder %s2034_s7, %s1545_s20  ;;  %s1615_s24 = smov [#allocation4]  }
 0x16f   : > { %s1549_s25 = sshll.u32 %s1615_s24, 4  ;;  %s1550_s25 = int_to_ptr.vmem [resolvable:$false] %s1549_s25 }
 0x170   : > { %p1547_p0 = pnand %p1546_p13, %p1676_p5  ;;  %s1551_s26 = scalar_lea.vmem %s1550_s25, 24576 }
 0x171   : > { %p1552_p2 = scmp.lt.s32.totalorder %s2034_s7, %s1550_s25  ;;  %p1553_p3 = scmp.lt.s32.totalorder %s1551_s26, %s1545_s20 }
 0x172   : > { %p1548_p1 = pneg %p1547_p0 }
 0x173   : > { %p1554_p4 = por %p1553_p3, %p1552_p2 }
 0x175   : > { %p1555_p7 = pnand %p1554_p4, %p1548_p1 }
 0x177   : > { %1558 = shalt.err (!%p1555_p7)
}
 0x178   : > { %s1559_s5 = scalar_lea.hbm %s2032_s17, 12288  ;;  %s1563_s27 = scalar_lea.hbm %s2105_s3, 24576 }
 0x179   : > { %p1560_p8 = scmp.ne.s32.totalorder %s2032_s17, %s1559_s5  ;;  %p1564_p11 = scmp.lt.s32.totalorder %s2032_s17, %s2105_s3 }
 0x17a   : > { %p1565_p12 = scmp.lt.s32.totalorder %s1563_s27, %s1559_s5 }
 0x17b   : > { %p1561_p9 = pnand %p1560_p8, %p1676_p5 }
 0x17c   : > { %p1566_p13 = por %p1565_p12, %p1564_p11 }
 0x17d   : > { %p1562_p10 = pneg %p1561_p9 }
 0x17f   : > { %p1567_p0 = pnand %p1566_p13, %p1562_p10 }
 0x181   : > { %1570 = shalt.err (!%p1567_p0)
}
 0x182   : > { %s1616_s4 = smov 384   ;;  %s1617_s6 = smov 24  }
 0x183   : > { %1471 = dma.vmem_to_hbm [thread:$0]  (%p1676_p5), %s2034_s7, 12288, %s2032_s17, %s1105_s11, %s1616_s4, %s1616_s4, %s1617_s6  }
 0x184 PF: > { %p1481_p1 = scmp.ge.s32.totalorder %s1609_s15, 2  ;;  %s1150_s8 = sand.u32 1, %s1597_s12  }
 0x185   : > { %s1151_s9 = scalar_lea.sflag [#allocation3], %s1150_s8 }
 0x186   : > { %p1475_p2 = pnand %p1481_p1, %p1680_p6 }
 0x188   : > { %p1476_p3 = pneg %p1475_p2 }
 0x18a   : > { %1588 = dma.done.wait (%p1476_p3), %s1151_s9, 2048  }
 0x18b   : > { %1590 = vsyncadd (%p1476_p3), %s1151_s9, 4294965248  ;;  %s1160_s16 = scalar_lea.sflag [#allocation5], %s1150_s8 }
 0x18c   : > { %1592 = dma.done.wait (%p1476_p3), %s1160_s16, 12288  }
 0x18d   : > { %1594 = vsyncadd (%p1476_p3), %s1160_s16, 4294955008  ;;  %p17_p5 = scmp.ge.s32.totalorder %s1663_s18, 4   ;;  %s2108_s12 = smov %s1601_s13 }
 0x18e   : > { %s2109_s13 = smov %s1605_s14  ;;  %s2110_s14 = smov %s1674_s21 }
 0x18f   : > { %s2111_s15 = smov %s1663_s18  ;;  %19 = sbr.rel (!%p17_p5) target bundleno = 5 (0x5), region = 80 }
 0x194   :  { %1165 = vsyncpa [#allocation3], 1 }
 0x195   :  { %1167 = vsyncpa [#allocation3 + $0x1], 1 }
 0x196   :  { %1168 = vsyncpa [#allocation5], 1 }
 0x197   :  { %1170 = vsyncpa [#allocation5 + $0x1], 1 }

</bundles_post_ra>
